<compile_context>
chip_gen: v6e
topology: v6e:2x2x1
jax: 0.10.0
libtpu: 0.0.40
codegen_flags: <defaults>
</compile_context>

<pallas_src>
import math

import jax
import jax.numpy as jnp
from jax.experimental import pallas as pl
from jax.experimental.pallas import tpu as pltpu


# ---------------------------------------------------------------------------
# Kernel: per-tile weighted sum over the L layer inputs, done in registers.
# The output tile is written exactly once.
# ---------------------------------------------------------------------------
def _fusion_kernel(w_ref, *refs):
    """w_ref: SMEM (L,) softmax-normalized weights (scalar prefetch).

    refs = L input tiles (VMEM, (tile_rows, lanes)) followed by the output tile.
    """
    x_refs, o_ref = refs[:-1], refs[-1]
    acc = x_refs[0][...].astype(jnp.float32) * w_ref[0]
    for l in range(1, len(x_refs)):
        acc += x_refs[l][...].astype(jnp.float32) * w_ref[l]
    o_ref[...] = acc.astype(o_ref.dtype)


# ---------------------------------------------------------------------------
# Layout / tiling policy.
# ---------------------------------------------------------------------------
_LANE_CHOICES = (4096, 2048, 1024, 512, 384, 256, 128)  # lane-dense widths (mult. of 128)
_ROW_ALIGN = 32                 # keeps (8,128)/(16,128)/(32,128) tiling legal for any dtype
_TARGET_TILE_BYTES = 3 << 20    # ~3 MiB per input buffer (2-4 MiB == HBM-roofline sweet spot)
_MIN_GRID_STEPS = 4             # never serialize into a 1-step grid on splittable arrays


def _vmem_budget_and_limit():
    """Generation-aware VMEM tile budget and scoped-VMEM limit."""
    cap = 64 * 1024 * 1024  # conservative default (v7x per-TensorCore VMEM)
    try:
        info = pltpu.get_tpu_info()
        cap = int(getattr(info, "vmem_capacity_bytes", cap)) or cap
    except Exception:
        pass
    budget = int(cap * 0.70)                       # resident double-buffered tiles
    limit = int(min(cap - (4 << 20), budget + (8 << 20)))  # small headroom for compiler scratch
    return budget, limit


def _plan_tile_rows(rows, lanes, num_layers, in_itemsize, out_itemsize, vmem_budget):
    """Row-tile size (multiple of _ROW_ALIGN), or None if this lane width cannot fit."""
    # Resident VMEM per row: L double-buffered input tiles + double-buffered output tile.
    per_row = lanes * (2 * num_layers * in_itemsize + 2 * out_itemsize)

    if rows <= _ROW_ALIGN:
        # Tiny array: full-extent block along rows (always layout-legal).
        return rows if per_row * rows <= vmem_budget else None

    max_rows_vmem = (vmem_budget // per_row) // _ROW_ALIGN * _ROW_ALIGN
    if max_rows_vmem < _ROW_ALIGN:
        return None  # does not fit even at the row floor -> caller tries narrower lanes

    # Byte-targeted tile (~_TARGET_TILE_BYTES per input buffer).
    target_rows = max(
        _ROW_ALIGN,
        (_TARGET_TILE_BYTES // (lanes * in_itemsize)) // _ROW_ALIGN * _ROW_ALIGN,
    )
    # Keep at least _MIN_GRID_STEPS grid steps so read/compute/writeback overlap and
    # v7x's two TensorCores both get tiles.
    steps_cap = max(_ROW_ALIGN, pl.cdiv(pl.cdiv(rows, _MIN_GRID_STEPS), _ROW_ALIGN) * _ROW_ALIGN)

    return min(target_rows, max_rows_vmem, steps_cap)


def _select_layout(n, num_layers, in_itemsize, out_itemsize, vmem_budget):
    """Pick (lanes, rows, tile_rows) for a 128-divisible flat length n, or None."""
    for lanes in _LANE_CHOICES:
        if n % lanes != 0:
            continue
        rows = n // lanes
        tile_rows = _plan_tile_rows(rows, lanes, num_layers, in_itemsize, out_itemsize,
                                    vmem_budget)
        if tile_rows is not None:
            return lanes, rows, tile_rows
    return None


# ---------------------------------------------------------------------------
# Wrapper: JAX/Pallas equivalent of AdaptiveLayerFusion.forward.
# ---------------------------------------------------------------------------
def adaptive_layer_fusion(layer_outputs, weights, out_dtype=None):
    """layer_outputs: list/tuple of L arrays, identical shape/dtype.
    weights: (L,) raw fusion weights (the nn.Parameter).
    out_dtype: optional override (e.g. bf16) to cut output HBM traffic; default
               matches PyTorch's promotion result_type(input, weights)."""
    layer_outputs = list(layer_outputs)
    num_layers = len(layer_outputs)
    assert weights.shape == (num_layers,)
    orig_shape = layer_outputs[0].shape
    in_dtype = layer_outputs[0].dtype
    if out_dtype is None:
        out_dtype = jnp.result_type(in_dtype, weights.dtype)
    in_itemsize = jnp.dtype(in_dtype).itemsize
    out_itemsize = jnp.dtype(out_dtype).itemsize
    n = math.prod(orig_shape)

    # Softmax over L scalars (parameter-setup glue; outside the kernel).
    w_norm = jax.nn.softmax(weights.astype(jnp.float32), axis=0)

    def _jax_weighted_sum(xs):
        acc = xs[0].astype(jnp.float32) * w_norm[0]
        for l in range(1, num_layers):
            acc = acc + xs[l].astype(jnp.float32) * w_norm[l]
        return acc.astype(out_dtype)

    # Split into a 128-aligned prefix (kernel) and a <128-element tail (plain JAX),
    # instead of jnp.pad-ing (and re-copying) every layer.
    n_main = (n // 128) * 128
    n_tail = n - n_main

    if n_main == 0:
        # Sub-128 array: kernel overhead dwarfs the work.
        return _jax_weighted_sum(layer_outputs)

    flats = [x.reshape(-1) for x in layer_outputs]
    if n_tail:
        mains = [f[:n_main] for f in flats]
        tails = [f[n_main:] for f in flats]
    else:
        mains = flats
        tails = None

    vmem_budget, vmem_limit = _vmem_budget_and_limit()
    plan = _select_layout(n_main, num_layers, in_itemsize, out_itemsize, vmem_budget)

    if plan is None:
        # Pathologically large L: no lane width fits even at the row floor.
        # TODO(synk): layer-chunked second "arbitrary" grid axis with a VMEM f32 accumulator.
        fused_main = _jax_weighted_sum(mains)
    else:
        lanes, rows, tile_rows = plan
        xs2d = [m.reshape(rows, lanes) for m in mains]
        grid = (pl.cdiv(rows, tile_rows),)
        block = (tile_rows, lanes)
        idx = lambda i, w_ref: (i, 0)  # scalar-prefetch ref arrives as trailing positional arg

        fused2d = pl.pallas_call(
            _fusion_kernel,
            out_shape=jax.ShapeDtypeStruct((rows, lanes), out_dtype),
            grid_spec=pltpu.PrefetchScalarGridSpec(
                num_scalar_prefetch=1,                        # w_norm -> SMEM
                grid=grid,
                in_specs=[pl.BlockSpec(block, idx) for _ in range(num_layers)],
                out_specs=pl.BlockSpec(block, idx),
            ),
            compiler_params=pltpu.CompilerParams(
                # Row tiles are independent -> megacore-parallel on v7x; no-op on v5e/v6e.
                dimension_semantics=("parallel",),
                vmem_limit_bytes=vmem_limit,
            ),
        )(w_norm, *xs2d)
        fused_main = fused2d.reshape(-1)

    if n_tail:
        fused_tail = _jax_weighted_sum(tails)
        flat = jnp.concatenate([fused_main, fused_tail])
    else:
        flat = fused_main
    return flat.reshape(orig_shape)


if __name__ == "__main__":
    key = jax.random.PRNGKey(0)
    L, B, S, H = 4, 2, 8, 32  # layer_num=4, batch=2, seq=8, hidden=32

    keys = jax.random.split(key, L + 1)
    layer_outputs = [
        jax.random.normal(keys[i], (B, S, H), dtype=jnp.float32) for i in range(L)
    ]
    # nn.Parameter(torch.ones(layer_num)) shape -> (L,); random init so softmax is non-uniform.
    weights = jax.random.normal(keys[L], (L,), dtype=jnp.float32)

    out = adaptive_layer_fusion(layer_outputs, weights)
    out = jax.block_until_ready(out)

    # Pure-JAX reference (mirrors the PyTorch forward exactly).
    w_norm = jax.nn.softmax(weights, axis=0)
    ref = sum(w * layer for w, layer in zip(w_norm, layer_outputs))
    assert out.shape == (B, S, H)
    assert jnp.allclose(out, ref, atol=1e-5, rtol=1e-5), "mismatch vs reference"

    # Secondary small shape exercising the non-128-divisible (prefix + tail) path.
    L2, shape2 = 3, (2, 8, 33)
    keys2 = jax.random.split(jax.random.PRNGKey(1), L2 + 1)
    outs2 = [jax.random.normal(keys2[i], shape2, dtype=jnp.float32) for i in range(L2)]
    w2 = jax.random.normal(keys2[L2], (L2,), dtype=jnp.float32)
    got2 = jax.block_until_ready(adaptive_layer_fusion(outs2, w2))
    ref2 = sum(w * layer for w, layer in zip(jax.nn.softmax(w2), outs2))
    assert got2.shape == shape2
    assert jnp.allclose(got2, ref2, atol=1e-5, rtol=1e-5), "mismatch vs reference (tail path)"

    print("KERNEL_OK")
</pallas_src>

<mosaic_0001>
module attributes {stable_mosaic.version = 11 : i64} {
  func.func @_fusion_kernel(%arg0: i32, %arg1: memref<4xf32, #tpu.memory_space<smem>>, %arg2: memref<1x512xf32, #tpu.memory_space<vmem>>, %arg3: memref<1x512xf32, #tpu.memory_space<vmem>>, %arg4: memref<1x512xf32, #tpu.memory_space<vmem>>, %arg5: memref<1x512xf32, #tpu.memory_space<vmem>>, %arg6: memref<1x512xf32, #tpu.memory_space<vmem>>) attributes {dimension_semantics = [#tpu.dimension_semantics<parallel>], iteration_bounds = array<i64: 1>, scalar_prefetch = 1 : i64, scratch_operands = 0 : i64, tpu.core_type = #tpu.core_type<tc>, window_params = [{transform_indices = @transform_0, window_bounds = array<i64: 1, 512>}, {transform_indices = @transform_1, window_bounds = array<i64: 1, 512>}, {transform_indices = @transform_2, window_bounds = array<i64: 1, 512>}, {transform_indices = @transform_3, window_bounds = array<i64: 1, 512>}, {transform_indices = @transform_4, window_bounds = array<i64: 1, 512>}]} {
    %c0 = arith.constant 0 : index
    %c0_0 = arith.constant 0 : index
    %0 = vector.load %arg2[%c0, %c0_0] : memref<1x512xf32, #tpu.memory_space<vmem>>, vector<1x512xf32>
    %c0_1 = arith.constant 0 : index
    %1 = memref.load %arg1[%c0_1] : memref<4xf32, #tpu.memory_space<smem>>
    %2 = vector.broadcast %1 : f32 to vector<1x512xf32>
    %3 = arith.mulf %0, %2 : vector<1x512xf32>
    %c0_2 = arith.constant 0 : index
    %c0_3 = arith.constant 0 : index
    %4 = vector.load %arg3[%c0_2, %c0_3] : memref<1x512xf32, #tpu.memory_space<vmem>>, vector<1x512xf32>
    %c1 = arith.constant 1 : index
    %5 = memref.load %arg1[%c1] : memref<4xf32, #tpu.memory_space<smem>>
    %6 = vector.broadcast %5 : f32 to vector<1x512xf32>
    %7 = arith.mulf %4, %6 : vector<1x512xf32>
    %8 = arith.addf %3, %7 : vector<1x512xf32>
    %c0_4 = arith.constant 0 : index
    %c0_5 = arith.constant 0 : index
    %9 = vector.load %arg4[%c0_4, %c0_5] : memref<1x512xf32, #tpu.memory_space<vmem>>, vector<1x512xf32>
    %c2 = arith.constant 2 : index
    %10 = memref.load %arg1[%c2] : memref<4xf32, #tpu.memory_space<smem>>
    %11 = vector.broadcast %10 : f32 to vector<1x512xf32>
    %12 = arith.mulf %9, %11 : vector<1x512xf32>
    %13 = arith.addf %8, %12 : vector<1x512xf32>
    %c0_6 = arith.constant 0 : index
    %c0_7 = arith.constant 0 : index
    %14 = vector.load %arg5[%c0_6, %c0_7] : memref<1x512xf32, #tpu.memory_space<vmem>>, vector<1x512xf32>
    %c3 = arith.constant 3 : index
    %15 = memref.load %arg1[%c3] : memref<4xf32, #tpu.memory_space<smem>>
    %16 = vector.broadcast %15 : f32 to vector<1x512xf32>
    %17 = arith.mulf %14, %16 : vector<1x512xf32>
    %18 = arith.addf %13, %17 : vector<1x512xf32>
    %c0_8 = arith.constant 0 : index
    %c0_9 = arith.constant 0 : index
    %19 = vector.load %arg6[%c0_8, %c0_9] : memref<1x512xf32, #tpu.memory_space<vmem>>, vector<1x512xf32>
    tpu.vector_store %arg6[%c0_8, %c0_9], %18 {strides = array<i32>} : memref<1x512xf32, #tpu.memory_space<vmem>>, vector<1x512xf32>,
    return
  }
  func.func @transform_0(%arg0: i32, %arg1: memref<4xf32, #tpu.memory_space<smem>>) -> (i32, i32) {
    %c0_i32 = arith.constant 0 : i32
    %c0_i32_0 = arith.constant 0 : i32
    return %arg0, %c0_i32 : i32, i32
  }
  func.func @transform_1(%arg0: i32, %arg1: memref<4xf32, #tpu.memory_space<smem>>) -> (i32, i32) {
    %c0_i32 = arith.constant 0 : i32
    %c0_i32_0 = arith.constant 0 : i32
    return %arg0, %c0_i32 : i32, i32
  }
  func.func @transform_2(%arg0: i32, %arg1: memref<4xf32, #tpu.memory_space<smem>>) -> (i32, i32) {
    %c0_i32 = arith.constant 0 : i32
    %c0_i32_0 = arith.constant 0 : i32
    return %arg0, %c0_i32 : i32, i32
  }
  func.func @transform_3(%arg0: i32, %arg1: memref<4xf32, #tpu.memory_space<smem>>) -> (i32, i32) {
    %c0_i32 = arith.constant 0 : i32
    %c0_i32_0 = arith.constant 0 : i32
    return %arg0, %c0_i32 : i32, i32
  }
  func.func @transform_4(%arg0: i32, %arg1: memref<4xf32, #tpu.memory_space<smem>>) -> (i32, i32) {
    %c0_i32 = arith.constant 0 : i32
    %c0_i32_0 = arith.constant 0 : i32
    return %arg0, %c0_i32 : i32, i32
  }
}

</mosaic_0001>

<bundles_post_ra>
// kernel: tpu_custom_call.1
= control target key start
LH: loop header
LB: loop body
LE: loop exit
PB: predicated region body
PF: predicated region fallthrough
CT: control target
= control target key end

     0   :  { %s202_s18 = smov [#allocation3]   ;;  %s255_s0 = inlined_call_operand.hbm [shape: f32[4], index: 0, kind: input, shape index: {}]   ;;  %s256_s1 = inlined_call_operand.hbm [shape: f32[1,512], index: 1, kind: input, shape index: {}]   ;;  %s257_s2 = inlined_call_operand.hbm [shape: f32[1,512], index: 2, kind: input, shape index: {}]   ;;  %s258_s3 = inlined_call_operand.vmem [shape: f32[1,512], index: 3, kind: input, shape index: {}]   ;;  %s259_s4 = inlined_call_operand.hbm [shape: f32[1,512], index: 4, kind: input, shape index: {}]   ;;  %s260_s5 = inlined_call_operand.hbm [shape: f32[1,512], index: 5, kind: output, shape index: {}]  }
   0x1   :  { %11 = dma.hbm_to_smem %s255_s0, 16, %s202_s18, [#allocation2] }
   0x2   :  { %194 = dma.done.wait [#allocation2], 16 }
   0x3   :  { %195 = vsyncadd [#allocation2], 4294967280 }
   0x4   :  { %13 = sfence }
   0x5   :  { %14 = vsyncpa [#allocation5], 0 }
   0x6   :  { %15 = vsyncpa [#allocation8], 0 }
   0x7   :  { %16 = vsyncpa [#allocation6], 0  ;;  %s203_s21 = smov [#allocation7]   ;;  %s204_s23 = smov [#allocation4]  }
   0x8   :  { %s33_s22 = sshll.u32 %s203_s21, 4  ;;  %s23_s24 = sshll.u32 %s204_s23, 4  ;;  %s34_s22 = int_to_ptr.vmem [resolvable:$true] %s33_s22  ;;  %s24_s24 = int_to_ptr.vmem [resolvable:$true] %s23_s24 }
   0x9   :  { %s122_s25 = scalar_lea.vmem %s34_s22, 64  ;;  %p127_p1 = scmp.lt.s32.totalorder %s34_s22, %s34_s22 }
   0xa   :  { %p123_p0 = scmp.ne.s32.totalorder %s34_s22, %s122_s25  ;;  %p128_p2 = scmp.lt.s32.totalorder %s122_s25, %s122_s25 }
   0xc   :  { %p129_p3 = por %p128_p2, %p127_p1 }
   0xe   :  { %p130_p4 = pnand %p129_p3, %p123_p0 }
  0x10   :  { %133 = shalt.err (!%p130_p4)
}
  0x11   :  { %36 = dma.hbm_to_vmem [thread:$0]  %s257_s2, 64, %s34_s22, [#allocation8]  }
  0x12   :  { %s142_s27 = scalar_lea.vmem %s24_s24, 64  ;;  %p147_p6 = scmp.lt.s32.totalorder %s24_s24, %s24_s24 }
  0x13   :  { %p143_p5 = scmp.ne.s32.totalorder %s24_s24, %s142_s27  ;;  %p148_p7 = scmp.lt.s32.totalorder %s142_s27, %s142_s27 }
  0x15   :  { %p149_p8 = por %p148_p7, %p147_p6 }
  0x17   :  { %p150_p9 = pnand %p149_p8, %p143_p5 }
  0x19   :  { %153 = shalt.err (!%p150_p9)
}
  0x1a   :  { %26 = dma.hbm_to_vmem [thread:$0]  %s256_s1, 64, %s24_s24, [#allocation5]  }
  0x1b   :  { %s205_s30 = smov [#allocation9]  }
  0x1c   :  { %s45_s6 = sshll.u32 %s205_s30, 4  ;;  %s46_s6 = int_to_ptr.vmem [resolvable:$true] %s45_s6 }
  0x1d   :  { %s162_s7 = scalar_lea.vmem %s46_s6, 64  ;;  %p167_p11 = scmp.lt.s32.totalorder %s46_s6, %s46_s6 }
  0x1e   :  { %p163_p10 = scmp.ne.s32.totalorder %s46_s6, %s162_s7  ;;  %p168_p12 = scmp.lt.s32.totalorder %s162_s7, %s162_s7 }
  0x20   :  { %p169_p13 = por %p168_p12, %p167_p11 }
  0x22   :  { %p170_p0 = pnand %p169_p13, %p163_p10 }
  0x24   :  { %173 = shalt.err (!%p170_p0)
}
  0x25   :  { %48 = dma.hbm_to_vmem [thread:$0]  %s259_s4, 64, %s46_s6, [#allocation8]  }
  0x26   :  { %196 = dma.done.wait [#allocation5], 64  }
  0x27   :  { %197 = vsyncadd [#allocation5], 4294967232 }
  0x28   :  { %198 = dma.done.wait [#allocation8], 128  }
  0x29   :  { %199 = vsyncadd [#allocation8], 4294967168  ;;  %s59_s9 = sld [smem:[#allocation3]]  ;;  %v58_v0 = vld [vmem:[#allocation4] sm:$0xf]  ;;  %v77_v11 = vlaneseq  ;;  %s206_s4 = smov [#allocation10]  }
  0x2a   :  { %s98_s1 = sld [smem:[#allocation3 + $0x1]]  ;;  %v62_v2 = vld [vmem:[#allocation7] sm:$0xf]  ;;  %v67_v3 = vld [vmem:[%s258_s3] sm:$0xf]  ;;  %s88_s14 = sshll.u32 %s206_s4, 4  ;;  %s89_s14 = int_to_ptr.vmem [resolvable:$true] %s88_s14 }
  0x2b   :  { %s99_s10 = sld [smem:[#allocation3 + $0x2]]  ;;  %v72_v6 = vld [vmem:[#allocation9] sm:$0xf]  ;;  %vm79_vm0 = vcmp.lt.s32.totalorder %v77_v11, 512  ;;  %s174_s15 = scalar_lea.vmem %s89_s14, 64 }
  0x2c   :  { %s100_s11 = sld [smem:[#allocation3 + $0x3]]  ;;  %p175_p1 = scmp.ne.s32.totalorder %s89_s14, %s174_s15 }
  0x2d   :  { %p179_p2 = scmp.lt.s32.totalorder %s89_s14, %s89_s14  ;;  %p180_p3 = scmp.lt.s32.totalorder %s174_s15, %s174_s15 }
  0x2f   :  { %v60_v1 = vstv %s59_s9  ;;  %p181_p4 = por %p180_p3, %p179_p2 }
  0x30   :  { %v61_v4 = vmul.f32 %v60_v1, %v58_v0  ;;  %v64_v5 = vstv %s98_s1 }
  0x31   :  { %v65_v7 = vmul.f32 %v64_v5, %v62_v2  ;;  %v69_v8 = vstv %s99_s10  ;;  %p182_p5 = pnand %p181_p4, %p175_p1 }
  0x32   :  { %v70_v9 = vmul.f32 %v69_v8, %v67_v3  ;;  %v74_v10 = vstv %s100_s11 }
  0x33   :  { %v66_v12 = vadd.f32 %v65_v7, %v61_v4  ;;  %v75_v13 = vmul.f32 %v74_v10, %v72_v6 }
  0x35   :  { %v71_v14 = vadd.f32 %v70_v9, %v66_v12 }
  0x37   :  { %v76_v15 = vadd.f32 %v75_v13, %v71_v14 }
  0x39   :  { %81 = vst.msk [vmem:[#allocation10] sm:$0xf] %vm79_vm0, %v76_v15 }
  0x3a   :  { %185 = shalt.err (!%p182_p5)
}
  0x3b   :  { %91 = dma.vmem_to_hbm [thread:$0]  %s89_s14, 64, %s260_s5, [#allocation6]  }
  0x3c   :  { %200 = dma.done.wait [#allocation6], 64  }
  0x3d   :  { %201 = vsyncadd [#allocation6], 4294967232 }
  0x3e   :  { %95 = vsyncpa [#allocation5], 1 }
  0x3f   :  { %96 = vsyncpa [#allocation8], 1 }
  0x40   :  { %97 = vsyncpa [#allocation6], 1 }

</bundles_post_ra>
